<compile_context>
chip_gen: v7x
topology: tpu7x:2x2x1
jax: 0.10.0
libtpu: 0.0.40
codegen_flags: <defaults>
</compile_context>

<pallas_src>
import math

import jax
import jax.numpy as jnp
from jax.experimental import pallas as pl
from jax.experimental.pallas import tpu as pltpu

IGNORE_INDEX = -1          # padding_idx
ALPHA = 0.1                # unused in forward math (only ignore_index matters)
# TODO(synk): exp_base / transit_time / cur_time are dead in forward (global_trust
# is overridden to 1 in the torch code), so they are intentionally not modeled.


def _make_kernel(num_classes, need_mask):
    inv_log_c = 1.0 / math.log(num_classes)

    def kernel(preds_ref, target_ref, out_ref, m_sc, l_sc, pick_sc, s_sc):
        k = pl.program_id(1)

        @pl.when(k == 0)
        def _():
            m_sc[...] = jnp.full(m_sc.shape, -jnp.inf, dtype=jnp.float32)
            l_sc[...] = jnp.zeros(l_sc.shape, dtype=jnp.float32)
            pick_sc[...] = jnp.zeros(pick_sc.shape, dtype=jnp.float32)
            s_sc[...] = jnp.zeros(s_sc.shape, dtype=jnp.float32)

        preds = preds_ref[...].astype(jnp.float32)        # (bb, T, tc)
        target = target_ref[...]                          # (bb, T, 1) int32
        bb, t_len, tc = preds.shape

        # Global class index of every lane in this chunk (T on sublanes, C on lanes,
        # matching preds => broadcasts are lane-local, no XLU relayout).
        cls = jax.lax.broadcasted_iota(jnp.int32, (bb, t_len, tc), 2) + k * tc
        if need_mask:
            logits = jnp.where(cls < num_classes, preds, -jnp.inf)
        else:
            logits = preds

        # ---- CrossEntropy over classes: online logsumexp + target-logit pick ----
        m_old = m_sc[...]
        m_new = jnp.maximum(m_old, jnp.max(logits, axis=-1, keepdims=True))
        e_z = jnp.exp(logits - m_new)                      # full-tensor exp #1
        l_sc[...] = (jnp.exp(m_old - m_new) * l_sc[...]
                     + jnp.sum(e_z, axis=-1, keepdims=True))
        m_sc[...] = m_new
        pick_sc[...] += jnp.sum(jnp.where(cls == target, preds, 0.0),
                                axis=-1, keepdims=True)

        # ---- softmax over T (dim=1); one exp, reuse e_zt for p and logp_t ----
        m_t = jnp.max(preds, axis=1, keepdims=True)        # (bb, 1, tc)
        zt = preds - m_t
        e_zt = jnp.exp(zt)                                 # full-tensor exp #2
        sum_t = jnp.sum(e_zt, axis=1, keepdims=True)       # (bb, 1, tc)
        p = e_zt * (1.0 / sum_t)                           # recip only on small tensor
        logp_t = zt - jnp.log(sum_t)                       # log only on small tensor
        contrib = p * logp_t                               # (bb, T, tc)
        if need_mask:
            contrib = jnp.where(cls < num_classes, contrib, 0.0)
        s_sc[...] += jnp.sum(contrib, axis=-1, keepdims=True)

        # ---- finalize: lane-dense partials row on the last class chunk ----
        @pl.when(k == pl.num_programs(1) - 1)
        def _():
            valid = (target != IGNORE_INDEX).astype(jnp.float32)   # (bb, T, 1)
            lse = m_sc[...] + jnp.log(l_sc[...])
            ce_num = jnp.sum((lse - pick_sc[...]) * valid)
            n_valid = jnp.sum(valid)
            s = s_sc[...]                                           # = -H_pred per (b,t)
            ent_sum = jnp.sum((1.0 + s * inv_log_c) * s)            # sum eps * sum_c p*logp
            lane = jax.lax.broadcasted_iota(jnp.int32, (8, 128), 1)
            sub = jax.lax.broadcasted_iota(jnp.int32, (8, 128), 0)
            row = (jnp.where(lane == 0, ce_num, 0.0)
                   + jnp.where(lane == 1, n_valid, 0.0)
                   + jnp.where(lane == 2, ent_sum, 0.0))
            out_ref[...] = jnp.where(sub == 0, row, 0.0)[None]

    return kernel


def _vmem_capacity_bytes():
    try:
        return int(pltpu.get_tpu_info().vmem_capacity_bytes)
    except Exception:
        return None


def _round_up(x, m):
    return ((x + m - 1) // m) * m


def _largest_divisor_leq(n, cap):
    best = 1
    for d in range(1, n + 1):
        if n % d == 0 and d <= cap:
            best = d
    return best


def _choose_tiling(B, T, C, budget_f32_bytes, prefer_split_b):
    """Pick (bb, tc, Cp): B-block, class-chunk, padded class count."""
    row_bytes = T * C * 4                          # one batch row of f32 temporaries
    if row_bytes <= budget_f32_bytes:
        tc = C                                     # full-C blocks, tile over B only
        max_bb = max(1, budget_f32_bytes // row_bytes)
        if prefer_split_b and B >= 2:
            max_bb = min(max_bb, max(1, B // 2))   # keep >=2 B-blocks (v7x: 2 TCs)
        bb = _largest_divisor_leq(B, max_bb)
    else:
        # Large vocab: tile the class axis with lane-aligned chunks.
        bb = 1
        tc = max(128, (budget_f32_bytes // (T * 4)) // 128 * 128)
        tc = min(tc, _round_up(C, 128))
    Cp = _round_up(C, tc)
    return bb, tc, Cp


def robust_wog_loss(preds, target, *, block_b=None, block_c=None):
    B, T, C = preds.shape

    vmem = _vmem_capacity_bytes()
    if vmem is not None and vmem >= (100 << 20):   # v5e / v6e: 128 MiB VMEM
        budget = 8 << 20
        vmem_limit = 96 << 20
        prefer_split_b = False
    else:                                          # v7x (64 MiB) or unknown
        budget = 4 << 20
        vmem_limit = 48 << 20
        prefer_split_b = True
    if vmem is not None:
        vmem_limit = min(vmem_limit, int(vmem * 0.75))

    bb, tc, Cp = _choose_tiling(B, T, C, budget, prefer_split_b)
    if block_b is not None:
        bb = block_b
    if block_c is not None:
        tc = block_c
        Cp = _round_up(C, tc)
    nb, nc = B // bb, Cp // tc
    need_mask = Cp != C

    preds_in = preds if Cp == C else jnp.pad(preds, ((0, 0), (0, 0), (0, Cp - C)))
    # (B, T, 1): T on sublanes matches preds layout; lane broadcast is free.
    target3 = target.astype(jnp.int32)[:, :, None]

    kernel = _make_kernel(C, need_mask)
    partials = pl.pallas_call(
        kernel,
        out_shape=jax.ShapeDtypeStruct((nb, 8, 128), jnp.float32),
        grid_spec=pltpu.PrefetchScalarGridSpec(
            num_scalar_prefetch=0,
            grid=(nb, nc),
            in_specs=[
                pl.BlockSpec((bb, T, tc), lambda i, k: (i, 0, k)),
                pl.BlockSpec((bb, T, 1), lambda i, k: (i, 0, 0)),
            ],
            out_specs=pl.BlockSpec((1, 8, 128), lambda i, k: (i, 0, 0)),
            scratch_shapes=[pltpu.VMEM((bb, T, 1), jnp.float32)] * 4,
        ),
        compiler_params=pltpu.CompilerParams(
            dimension_semantics=("parallel", "arbitrary"),
            vmem_limit_bytes=vmem_limit,
        ),
    )(preds_in, target3)

    ce_num = jnp.sum(partials[:, 0, 0])
    n_valid = jnp.sum(partials[:, 0, 1])
    ent_sum = jnp.sum(partials[:, 0, 2])
    ce_loss = ce_num / n_valid                     # NaN if all tokens ignored (matches torch)
    ent_loss = ent_sum / jnp.float32(B * T * C)
    return ce_loss - ent_loss


def robust_wog_ref(preds, target):
    """Pure-JAX reference mirroring the PyTorch forward exactly."""
    B, T, C = preds.shape
    logp_c = jax.nn.log_softmax(preds, axis=-1)
    safe_t = jnp.where(target == IGNORE_INDEX, 0, target)
    picked = jnp.take_along_axis(logp_c, safe_t[:, :, None], axis=-1)[..., 0]
    valid = (target != IGNORE_INDEX).astype(jnp.float32)
    ce = jnp.sum(-picked * valid) / jnp.sum(valid)
    p = jax.nn.softmax(preds, axis=1)
    h = jnp.sum(-(p + 1e-12) * jnp.log(p + 1e-12), axis=-1)
    eps = 1.0 - h / jnp.log(jnp.float32(C))
    ent_per_b = jnp.mean(p * jnp.log(p) * eps[:, :, None], axis=(1, 2))
    ent_loss = jnp.mean(ent_per_b)
    return ce - ent_loss


if __name__ == "__main__":
    key = jax.random.PRNGKey(0)

    # Case 1: small, full-C block path.
    B, T, C = 2, 8, 32
    k1, k2, k3, k4 = jax.random.split(key, 4)
    preds = jax.random.normal(k1, (B, T, C), dtype=jnp.float32)
    target = jax.random.randint(k2, (B, T), 0, C, dtype=jnp.int32)
    target = target.at[0, 0].set(IGNORE_INDEX).at[1, 3].set(IGNORE_INDEX)

    loss = robust_wog_loss(preds, target)
    jax.block_until_ready(loss)
    ref = robust_wog_ref(preds, target)
    assert jnp.allclose(loss, ref, atol=1e-5, rtol=1e-5), (loss, ref)

    # Case 2: exercise the C-tiled online-logsumexp path (pad 200 -> 256, nc=2).
    C2 = 200
    preds2 = jax.random.normal(k3, (B, T, C2), dtype=jnp.float32)
    target2 = jax.random.randint(k4, (B, T), 0, C2, dtype=jnp.int32)
    target2 = target2.at[0, 1].set(IGNORE_INDEX)

    loss2 = robust_wog_loss(preds2, target2, block_c=128)
    jax.block_until_ready(loss2)
    ref2 = robust_wog_ref(preds2, target2)
    assert jnp.allclose(loss2, ref2, atol=1e-5, rtol=1e-5), (loss2, ref2)

    print("KERNEL_OK")
</pallas_src>

<mosaic_0001>
module attributes {stable_mosaic.version = 11 : i64} {
  func.func @kernel(%arg0: i32, %arg1: i32, %arg2: memref<1x8x32xf32, #tpu.memory_space<vmem>>, %arg3: memref<1x8x1xi32, #tpu.memory_space<vmem>>, %arg4: memref<1x8x128xf32, #tpu.memory_space<vmem>>, %arg5: memref<1x8x1xf32, #tpu.memory_space<vmem>>, %arg6: memref<1x8x1xf32, #tpu.memory_space<vmem>>, %arg7: memref<1x8x1xf32, #tpu.memory_space<vmem>>, %arg8: memref<1x8x1xf32, #tpu.memory_space<vmem>>) attributes {dimension_semantics = [#tpu.dimension_semantics<parallel>, #tpu.dimension_semantics<arbitrary>], iteration_bounds = array<i64: 2, 1>, scalar_prefetch = 0 : i64, scratch_operands = 4 : i64, tpu.core_type = #tpu.core_type<tc>, window_params = [{transform_indices = @transform_0, window_bounds = array<i64: 1, 8, 32>}, {transform_indices = @transform_1, window_bounds = array<i64: 1, 8, 1>}, {transform_indices = @transform_2, window_bounds = array<i64: 1, 8, 128>}]} {
    %c0_i32 = arith.constant 0 : i32
    %0 = arith.cmpi eq, %arg1, %c0_i32 : i32
    %1 = arith.extui %0 : i1 to i32
    %c0_i32_0 = arith.constant 0 : i32
    %2 = arith.cmpi ne, %1, %c0_i32_0 : i32
    scf.if %2 {
      %cst_39 = arith.constant 0xFF800000 : f32
      %57 = vector.broadcast %cst_39 : f32 to vector<1x8x1xf32>
      %c0_40 = arith.constant 0 : index
      %c0_41 = arith.constant 0 : index
      %c0_42 = arith.constant 0 : index
      %58 = vector.load %arg5[%c0_40, %c0_41, %c0_42] : memref<1x8x1xf32, #tpu.memory_space<vmem>>, vector<1x8x1xf32>
      tpu.vector_store %arg5[%c0_40, %c0_41, %c0_42], %57 {strides = array<i32>} : memref<1x8x1xf32, #tpu.memory_space<vmem>>, vector<1x8x1xf32>,
      %cst_43 = arith.constant 0.000000e+00 : f32
      %59 = vector.broadcast %cst_43 : f32 to vector<1x8x1xf32>
      %c0_44 = arith.constant 0 : index
      %c0_45 = arith.constant 0 : index
      %c0_46 = arith.constant 0 : index
      %60 = vector.load %arg6[%c0_44, %c0_45, %c0_46] : memref<1x8x1xf32, #tpu.memory_space<vmem>>, vector<1x8x1xf32>
      tpu.vector_store %arg6[%c0_44, %c0_45, %c0_46], %59 {strides = array<i32>} : memref<1x8x1xf32, #tpu.memory_space<vmem>>, vector<1x8x1xf32>,
      %cst_47 = arith.constant 0.000000e+00 : f32
      %61 = vector.broadcast %cst_47 : f32 to vector<1x8x1xf32>
      %c0_48 = arith.constant 0 : index
      %c0_49 = arith.constant 0 : index
      %c0_50 = arith.constant 0 : index
      %62 = vector.load %arg7[%c0_48, %c0_49, %c0_50] : memref<1x8x1xf32, #tpu.memory_space<vmem>>, vector<1x8x1xf32>
      tpu.vector_store %arg7[%c0_48, %c0_49, %c0_50], %61 {strides = array<i32>} : memref<1x8x1xf32, #tpu.memory_space<vmem>>, vector<1x8x1xf32>,
      %cst_51 = arith.constant 0.000000e+00 : f32
      %63 = vector.broadcast %cst_51 : f32 to vector<1x8x1xf32>
      %c0_52 = arith.constant 0 : index
      %c0_53 = arith.constant 0 : index
      %c0_54 = arith.constant 0 : index
      %64 = vector.load %arg8[%c0_52, %c0_53, %c0_54] : memref<1x8x1xf32, #tpu.memory_space<vmem>>, vector<1x8x1xf32>
      tpu.vector_store %arg8[%c0_52, %c0_53, %c0_54], %63 {strides = array<i32>} : memref<1x8x1xf32, #tpu.memory_space<vmem>>, vector<1x8x1xf32>,
    } else {
    }
    %c0 = arith.constant 0 : index
    %c0_1 = arith.constant 0 : index
    %c0_2 = arith.constant 0 : index
    %3 = vector.load %arg2[%c0, %c0_1, %c0_2] : memref<1x8x32xf32, #tpu.memory_space<vmem>>, vector<1x8x32xf32>
    %c0_3 = arith.constant 0 : index
    %c0_4 = arith.constant 0 : index
    %c0_5 = arith.constant 0 : index
    %4 = vector.load %arg3[%c0_3, %c0_4, %c0_5] : memref<1x8x1xi32, #tpu.memory_space<vmem>>, vector<1x8x1xi32>
    %5 = tpu.iota {dimensions = array<i32: 2>} : vector<1x8x32xi32>
    %c32_i32 = arith.constant 32 : i32
    %6 = arith.muli %arg1, %c32_i32 : i32
    %7 = vector.broadcast %6 : i32 to vector<1x8x32xi32>
    %8 = arith.addi %5, %7 : vector<1x8x32xi32>
    %c0_6 = arith.constant 0 : index
    %c0_7 = arith.constant 0 : index
    %c0_8 = arith.constant 0 : index
    %9 = vector.load %arg5[%c0_6, %c0_7, %c0_8] : memref<1x8x1xf32, #tpu.memory_space<vmem>>, vector<1x8x1xf32>
    %cst = arith.constant dense<0xFF800000> : vector<1x8xf32>
    %10 = vector.multi_reduction <maximumf>, %3, %cst [2] : vector<1x8x32xf32> to vector<1x8xf32>
    %11 = vector.shape_cast %10 : vector<1x8xf32> to vector<1x8x1xf32>
    %12 = arith.maximumf %9, %11 : vector<1x8x1xf32>
    %13 = vector.broadcast %12 : vector<1x8x1xf32> to vector<1x8x32xf32>
    %14 = arith.subf %3, %13 : vector<1x8x32xf32>
    %15 = math.exp %14 : vector<1x8x32xf32>
    %16 = arith.subf %9, %12 : vector<1x8x1xf32>
    %17 = math.exp %16 : vector<1x8x1xf32>
    %c0_9 = arith.constant 0 : index
    %c0_10 = arith.constant 0 : index
    %c0_11 = arith.constant 0 : index
    %18 = vector.load %arg6[%c0_9, %c0_10, %c0_11] : memref<1x8x1xf32, #tpu.memory_space<vmem>>, vector<1x8x1xf32>
    %19 = arith.mulf %17, %18 : vector<1x8x1xf32>
    %cst_12 = arith.constant dense<0.000000e+00> : vector<1x8xf32>
    %20 = vector.multi_reduction <add>, %15, %cst_12 [2] : vector<1x8x32xf32> to vector<1x8xf32>
    %21 = vector.shape_cast %20 : vector<1x8xf32> to vector<1x8x1xf32>
    %22 = arith.addf %19, %21 : vector<1x8x1xf32>
    %c0_13 = arith.constant 0 : index
    %c0_14 = arith.constant 0 : index
    %c0_15 = arith.constant 0 : index
    %23 = vector.load %arg6[%c0_13, %c0_14, %c0_15] : memref<1x8x1xf32, #tpu.memory_space<vmem>>, vector<1x8x1xf32>
    tpu.vector_store %arg6[%c0_13, %c0_14, %c0_15], %22 {strides = array<i32>} : memref<1x8x1xf32, #tpu.memory_space<vmem>>, vector<1x8x1xf32>,
    %c0_16 = arith.constant 0 : index
    %c0_17 = arith.constant 0 : index
    %c0_18 = arith.constant 0 : index
    %24 = vector.load %arg5[%c0_16, %c0_17, %c0_18] : memref<1x8x1xf32, #tpu.memory_space<vmem>>, vector<1x8x1xf32>
    tpu.vector_store %arg5[%c0_16, %c0_17, %c0_18], %12 {strides = array<i32>} : memref<1x8x1xf32, #tpu.memory_space<vmem>>, vector<1x8x1xf32>,
    %c0_19 = arith.constant 0 : index
    %c0_20 = arith.constant 0 : index
    %c0_21 = arith.constant 0 : index
    %25 = vector.load %arg7[%c0_19, %c0_20, %c0_21] : memref<1x8x1xf32, #tpu.memory_space<vmem>>, vector<1x8x1xf32>
    %26 = vector.broadcast %4 : vector<1x8x1xi32> to vector<1x8x32xi32>
    %27 = arith.cmpi eq, %8, %26 : vector<1x8x32xi32>
    %cst_22 = arith.constant 0.000000e+00 : f32
    %28 = vector.broadcast %cst_22 : f32 to vector<1x8x32xf32>
    %29 = arith.select %27, %3, %28 : vector<1x8x32xi1>, vector<1x8x32xf32>
    %cst_23 = arith.constant dense<0.000000e+00> : vector<1x8xf32>
    %30 = vector.multi_reduction <add>, %29, %cst_23 [2] : vector<1x8x32xf32> to vector<1x8xf32>
    %31 = vector.shape_cast %30 : vector<1x8xf32> to vector<1x8x1xf32>
    %32 = arith.addf %25, %31 : vector<1x8x1xf32>
    %c0_24 = arith.constant 0 : index
    %c0_25 = arith.constant 0 : index
    %c0_26 = arith.constant 0 : index
    %33 = vector.load %arg7[%c0_24, %c0_25, %c0_26] : memref<1x8x1xf32, #tpu.memory_space<vmem>>, vector<1x8x1xf32>
    tpu.vector_store %arg7[%c0_24, %c0_25, %c0_26], %32 {strides = array<i32>} : memref<1x8x1xf32, #tpu.memory_space<vmem>>, vector<1x8x1xf32>,
    %cst_27 = arith.constant dense<0xFF800000> : vector<1x32xf32>
    %34 = vector.multi_reduction <maximumf>, %3, %cst_27 [1] : vector<1x8x32xf32> to vector<1x32xf32>
    %35 = vector.shape_cast %34 : vector<1x32xf32> to vector<1x1x32xf32>
    %36 = vector.broadcast %35 : vector<1x1x32xf32> to vector<1x8x32xf32>
    %37 = arith.subf %3, %36 : vector<1x8x32xf32>
    %38 = math.exp %37 : vector<1x8x32xf32>
    %cst_28 = arith.constant dense<0.000000e+00> : vector<1x32xf32>
    %39 = vector.multi_reduction <add>, %38, %cst_28 [1] : vector<1x8x32xf32> to vector<1x32xf32>
    %40 = vector.shape_cast %39 : vector<1x32xf32> to vector<1x1x32xf32>
    %cst_29 = arith.constant 1.000000e+00 : f32
    %41 = vector.broadcast %cst_29 : f32 to vector<1x1x32xf32>
    %42 = arith.divf %41, %40 : vector<1x1x32xf32>
    %43 = vector.broadcast %42 : vector<1x1x32xf32> to vector<1x8x32xf32>
    %44 = arith.mulf %38, %43 : vector<1x8x32xf32>
    %45 = math.log %40 : vector<1x1x32xf32>
    %46 = vector.broadcast %45 : vector<1x1x32xf32> to vector<1x8x32xf32>
    %47 = arith.subf %37, %46 : vector<1x8x32xf32>
    %48 = arith.mulf %44, %47 : vector<1x8x32xf32>
    %c0_30 = arith.constant 0 : index
    %c0_31 = arith.constant 0 : index
    %c0_32 = arith.constant 0 : index
    %49 = vector.load %arg8[%c0_30, %c0_31, %c0_32] : memref<1x8x1xf32, #tpu.memory_space<vmem>>, vector<1x8x1xf32>
    %cst_33 = arith.constant dense<0.000000e+00> : vector<1x8xf32>
    %50 = vector.multi_reduction <add>, %48, %cst_33 [2] : vector<1x8x32xf32> to vector<1x8xf32>
    %51 = vector.shape_cast %50 : vector<1x8xf32> to vector<1x8x1xf32>
    %52 = arith.addf %49, %51 : vector<1x8x1xf32>
    %c0_34 = arith.constant 0 : index
    %c0_35 = arith.constant 0 : index
    %c0_36 = arith.constant 0 : index
    %53 = vector.load %arg8[%c0_34, %c0_35, %c0_36] : memref<1x8x1xf32, #tpu.memory_space<vmem>>, vector<1x8x1xf32>
    tpu.vector_store %arg8[%c0_34, %c0_35, %c0_36], %52 {strides = array<i32>} : memref<1x8x1xf32, #tpu.memory_space<vmem>>, vector<1x8x1xf32>,
    %c0_i32_37 = arith.constant 0 : i32
    %54 = arith.cmpi eq, %arg1, %c0_i32_37 : i32
    %55 = arith.extui %54 : i1 to i32
    %c0_i32_38 = arith.constant 0 : i32
    %56 = arith.cmpi ne, %55, %c0_i32_38 : i32
    scf.if %56 {
      %c-1_i32 = arith.constant -1 : i32
      %57 = vector.broadcast %c-1_i32 : i32 to vector<1x8x1xi32>
      %58 = arith.cmpi ne, %4, %57 : vector<1x8x1xi32>
      %59 = arith.extui %58 : vector<1x8x1xi1> to vector<1x8x1xi32>
      %60 = arith.sitofp %59 : vector<1x8x1xi32> to vector<1x8x1xf32>
      %c0_39 = arith.constant 0 : index
      %c0_40 = arith.constant 0 : index
      %c0_41 = arith.constant 0 : index
      %61 = vector.load %arg5[%c0_39, %c0_40, %c0_41] : memref<1x8x1xf32, #tpu.memory_space<vmem>>, vector<1x8x1xf32>
      %c0_42 = arith.constant 0 : index
      %c0_43 = arith.constant 0 : index
      %c0_44 = arith.constant 0 : index
      %62 = vector.load %arg6[%c0_42, %c0_43, %c0_44] : memref<1x8x1xf32, #tpu.memory_space<vmem>>, vector<1x8x1xf32>
      %63 = math.log %62 : vector<1x8x1xf32>
      %64 = arith.addf %61, %63 : vector<1x8x1xf32>
      %c0_45 = arith.constant 0 : index
      %c0_46 = arith.constant 0 : index
      %c0_47 = arith.constant 0 : index
      %65 = vector.load %arg7[%c0_45, %c0_46, %c0_47] : memref<1x8x1xf32, #tpu.memory_space<vmem>>, vector<1x8x1xf32>
      %66 = arith.subf %64, %65 : vector<1x8x1xf32>
      %67 = arith.mulf %66, %60 : vector<1x8x1xf32>
      %68 = vector.shape_cast %67 : vector<1x8x1xf32> to vector<1x1x8x1xf32>
      %cst_48 = arith.constant dense<0.000000e+00> : vector<1xf32>
      %69 = vector.multi_reduction <add>, %68, %cst_48 [1, 2, 3] : vector<1x1x8x1xf32> to vector<1xf32>
      %70 = vector.shape_cast %69 : vector<1xf32> to vector<1x1x1x1xf32>
      %71 = vector.extract %70[0, 0, 0, 0] : f32 from vector<1x1x1x1xf32>
      %72 = vector.shape_cast %60 : vector<1x8x1xf32> to vector<1x1x8x1xf32>
      %cst_49 = arith.constant dense<0.000000e+00> : vector<1xf32>
      %73 = vector.multi_reduction <add>, %72, %cst_49 [1, 2, 3] : vector<1x1x8x1xf32> to vector<1xf32>
      %74 = vector.shape_cast %73 : vector<1xf32> to vector<1x1x1x1xf32>
      %75 = vector.extract %74[0, 0, 0, 0] : f32 from vector<1x1x1x1xf32>
      %c0_50 = arith.constant 0 : index
      %c0_51 = arith.constant 0 : index
      %c0_52 = arith.constant 0 : index
      %76 = vector.load %arg8[%c0_50, %c0_51, %c0_52] : memref<1x8x1xf32, #tpu.memory_space<vmem>>, vector<1x8x1xf32>
      %cst_53 = arith.constant 0.288539022 : f32
      %77 = vector.broadcast %cst_53 : f32 to vector<1x8x1xf32>
      %78 = arith.mulf %76, %77 : vector<1x8x1xf32>
      %cst_54 = arith.constant 1.000000e+00 : f32
      %79 = vector.broadcast %cst_54 : f32 to vector<1x8x1xf32>
      %80 = arith.addf %79, %78 : vector<1x8x1xf32>
      %81 = arith.mulf %80, %76 : vector<1x8x1xf32>
      %82 = vector.shape_cast %81 : vector<1x8x1xf32> to vector<1x1x8x1xf32>
      %cst_55 = arith.constant dense<0.000000e+00> : vector<1xf32>
      %83 = vector.multi_reduction <add>, %82, %cst_55 [1, 2, 3] : vector<1x1x8x1xf32> to vector<1xf32>
      %84 = vector.shape_cast %83 : vector<1xf32> to vector<1x1x1x1xf32>
      %85 = vector.extract %84[0, 0, 0, 0] : f32 from vector<1x1x1x1xf32>
      %86 = tpu.iota {dimensions = array<i32: 1>} : vector<8x128xi32>
      %87 = tpu.iota {dimensions = array<i32: 0>} : vector<8x128xi32>
      %c0_i32_56 = arith.constant 0 : i32
      %88 = vector.broadcast %c0_i32_56 : i32 to vector<8x128xi32>
      %89 = arith.cmpi eq, %86, %88 : vector<8x128xi32>
      %cst_57 = arith.constant 0.000000e+00 : f32
      %90 = vector.broadcast %71 : f32 to vector<8x128xf32>
      %91 = vector.broadcast %cst_57 : f32 to vector<8x128xf32>
      %92 = arith.select %89, %90, %91 : vector<8x128xi1>, vector<8x128xf32>
      %c1_i32 = arith.constant 1 : i32
      %93 = vector.broadcast %c1_i32 : i32 to vector<8x128xi32>
      %94 = arith.cmpi eq, %86, %93 : vector<8x128xi32>
      %cst_58 = arith.constant 0.000000e+00 : f32
      %95 = vector.broadcast %75 : f32 to vector<8x128xf32>
      %96 = vector.broadcast %cst_58 : f32 to vector<8x128xf32>
      %97 = arith.select %94, %95, %96 : vector<8x128xi1>, vector<8x128xf32>
      %98 = arith.addf %92, %97 : vector<8x128xf32>
      %c2_i32 = arith.constant 2 : i32
      %99 = vector.broadcast %c2_i32 : i32 to vector<8x128xi32>
      %100 = arith.cmpi eq, %86, %99 : vector<8x128xi32>
      %cst_59 = arith.constant 0.000000e+00 : f32
      %101 = vector.broadcast %85 : f32 to vector<8x128xf32>
      %102 = vector.broadcast %cst_59 : f32 to vector<8x128xf32>
      %103 = arith.select %100, %101, %102 : vector<8x128xi1>, vector<8x128xf32>
      %104 = arith.addf %98, %103 : vector<8x128xf32>
      %c0_i32_60 = arith.constant 0 : i32
      %105 = vector.broadcast %c0_i32_60 : i32 to vector<8x128xi32>
      %106 = arith.cmpi eq, %87, %105 : vector<8x128xi32>
      %cst_61 = arith.constant 0.000000e+00 : f32
      %107 = vector.broadcast %cst_61 : f32 to vector<8x128xf32>
      %108 = arith.select %106, %104, %107 : vector<8x128xi1>, vector<8x128xf32>
      %109 = vector.shape_cast %108 : vector<8x128xf32> to vector<1x8x128xf32>
      %c0_62 = arith.constant 0 : index
      %c0_63 = arith.constant 0 : index
      %c0_64 = arith.constant 0 : index
      %110 = vector.load %arg4[%c0_62, %c0_63, %c0_64] : memref<1x8x128xf32, #tpu.memory_space<vmem>>, vector<1x8x128xf32>
      tpu.vector_store %arg4[%c0_62, %c0_63, %c0_64], %109 {strides = array<i32>} : memref<1x8x128xf32, #tpu.memory_space<vmem>>, vector<1x8x128xf32>,
    } else {
    }
    return
  }
  func.func @transform_0(%arg0: i32, %arg1: i32) -> (i32, i32, i32) {
    %c0_i32 = arith.constant 0 : i32
    %c0_i32_0 = arith.constant 0 : i32
    return %arg0, %c0_i32, %arg1 : i32, i32, i32
  }
  func.func @transform_1(%arg0: i32, %arg1: i32) -> (i32, i32, i32) {
    %c0_i32 = arith.constant 0 : i32
    %c0_i32_0 = arith.constant 0 : i32
    %c0_i32_1 = arith.constant 0 : i32
    return %arg0, %c0_i32, %c0_i32_0 : i32, i32, i32
  }
  func.func @transform_2(%arg0: i32, %arg1: i32) -> (i32, i32, i32) {
    %c0_i32 = arith.constant 0 : i32
    %c0_i32_0 = arith.constant 0 : i32
    %c0_i32_1 = arith.constant 0 : i32
    return %arg0, %c0_i32, %c0_i32_0 : i32, i32, i32
  }
}

</mosaic_0001>

<bundles_post_ra>
// kernel: tpu_custom_call.1
= control target key start
LH: loop header
LB: loop body
LE: loop exit
PB: predicated region body
PF: predicated region fallthrough
CT: control target
= control target key end

     0   :  { %7 = vsyncpa [#allocation7], 0  ;;  %s750_s0 = inlined_call_operand.vmem [shape: f32[2,8,32], index: 0, kind: input, shape index: {}]   ;;  %s751_s1 = inlined_call_operand.vmem [shape: s32[2,8,1], index: 1, kind: input, shape index: {}]   ;;  %s752_s2 = inlined_call_operand.hbm [shape: f32[2,8,128], index: 2, kind: output, shape index: {}]  }
   0x1   :  { %9 = vsyncpa [#allocation7 + $0x1], 0  ;;  %s611_s9 = smov 0   ;;  %s613_s10 = smov 0  }
   0x2   :  { %s615_s11 = smov 0   ;;  %s617_s12 = smov 0  }
   0x3   :  { %s619_s13 = smov 0   ;;  %s621_s14 = smov 0  }
   0x4 LB: > { %s421_s15 = sadd.s32 4294967295, %s590_s14   ;;  %s422_s16 = sadd.s32 4294967294, %s590_s14   ;;  %s590_s14 = sphi %s621_s14, %s15_s14   ;;  %s586_s13 = sphi %s619_s13, %s759_s13   ;;  %s582_s12 = sphi %s617_s12, %s758_s12   ;;  %s578_s11 = sphi %s615_s11, %s757_s11   ;;  %s574_s10 = sphi %s613_s10, %s756_s10   ;;  %s570_s9 = sphi %s611_s9, %s755_s9  }
   0x5   : > { %s27_s17 = sadd.s32 1, %s586_s13  ;;  %s88_s18 = sadd.s32 1, %s578_s11 }
   0x6   : > { %p29_p0 = scmp.ge.s32.totalorder %s27_s17, 2  ;;  %p98_p1 = scmp.ne.s32.totalorder %s578_s11, %s574_s10 }
   0x7   : > { %p99_p2 = scmp.eq.s32.totalorder %s421_s15, 1  ;;  %p104_p3 = scmp.ne.s32.totalorder %s574_s10, %s570_s9 }
   0x8   : > { %s761_s17 = smov (%p29_p0, %s27_s17), 0  ;;  %p105_p5 = scmp.eq.s32.totalorder %s422_s16, 1 }
   0x9   : > { %p651_p4 = por %p99_p2, %p98_p1  ;;  %s85_s20 = ssub.s32 %s586_s13, %s761_s17 }
   0xa   : > { %p425_p6 = scmp.ge.s32.totalorder %s590_s14, 1  ;;  %p86_p7 = scmp.eq.s32.totalorder %s85_s20, 0 }
   0xb   : > { %p658_p8 = por %p105_p5, %p104_p3  ;;  %p140_p9 = scmp.lt.s32.totalorder %s590_s14, 3 }
   0xc   : > { %s664_s22 = scalar_select %p86_p7, %s578_s11, %s88_s18  }
   0xd   : > { %p141_p10 = pnand %p425_p6, %p140_p9 }
   0xe   : > { %p168_p11 = scmp.lt.s32.totalorder (!%p141_p10), %s582_s12, 1  ;;  %vm183_vm0 = vcmask (!%p141_p10), 7168   ;;  %v592_v0 = vmov (!%p141_p10), -inf   ;;  %vm196_vm1 = vcmask (!%p141_p10), 261120   ;;  %v593_v3 = vmov (!%p141_p10), 0   ;;  %s165_s3 = sand.u32 (!%p141_p10), 1, %s574_s10  }
   0xf   : > { %144 = sbr.rel (%p141_p10) target bundleno = 714 (0x2ca), region = 28  ;;  %184 = vst.msk [vmem:[#allocation2] sm:$0xff] (!%p141_p10), %vm183_vm0, %v592_v0  ;;  %498 = vset.pattern.permute.xlu0 (!%p141_p10), %v593_v3  ;;  %499 = vset.pattern.permute.xlu1 (!%p141_p10), %v593_v3  ;;  %v594_v5 = vmov (!%p141_p10), 0.0   ;;  %v190_v29 = vlaneseq (!%p141_p10)  ;;  %s426_s4 = sshll.u32 (!%p141_p10), %s165_s3, 3 }
  0x10   : > { %185 = vst.msk [vmem:[#allocation3] sm:$0xff] (!%p141_p10), %vm183_vm0, %v594_v5  ;;  %186 = vst.msk [vmem:[#allocation4] sm:$0xff] (!%p141_p10), %vm183_vm0, %v594_v5  ;;  %s431_s8 = sshll.u32 (!%p141_p10), %s582_s12, 7  ;;  %s167_s15 = scalar_lea.vmem (!%p141_p10), [#allocation6], %s426_s4 }
  0x11   : > { %187 = vst.msk [vmem:[#allocation5] sm:$0xff] (!%p141_p10), %vm183_vm0, %v594_v5  ;;  %v682_v31 = vand.u32 (!%p141_p10), 127, %v190_v29  ;;  %s339_s16 = sshll.u32 (!%p141_p10), %s167_s15, 4  ;;  %s705_s16 = int_to_ptr.vmem [resolvable:$true] %s339_s16 }
  0x12   : > { %s512_s25 = scalar_lea.vmem (!%p141_p10), %s705_s16, 128 }
  0x13   : > { %vm311_vm4 = vcmp.eq.s32.totalorder (!%p141_p10), %v682_v31, 0  ;;  %vm314_vm5 = vcmp.eq.s32.totalorder (!%p141_p10), %v682_v31, 1  ;;  %vm318_vm6 = vcmp.eq.s32.totalorder (!%p141_p10), %v682_v31, 2  ;;  %p513_p12 = scmp.ne.s32.totalorder (!%p141_p10), %s705_s16, %s512_s25 }
  0x15   : > { %p514_p13 = pnand (!%p141_p10), %p513_p12, %p651_p4 }
  0x16   : > { %s169_s23 = scalar_select %p168_p11, %s582_s12, 1  ;;  %v195_v6 = vld [vmem:[#allocation2] sm:$0xff] }
  0x17   : > { %v212_v47 = vld [vmem:[#allocation3] sm:$0xff]  ;;  %v221_v51 = vld [vmem:[#allocation4] sm:$0xff]  ;;  %p515_p0 = pneg %p514_p13  ;;  %s595_s12 = smov [#allocation6]  }
  0x18   : > { %s427_s24 = sshll.u32 %s169_s23, 3  ;;  %v255_v54 = vld [vmem:[#allocation5] sm:$0xff]  ;;  %s703_s23 = scalar_lea.hbm %s752_s2, %s431_s8 }
  0x19   : > { %s174_s27 = scalar_lea.vmem %s750_s0, %s427_s24  ;;  %s178_s30 = scalar_lea.vmem %s751_s1, %s427_s24 }
  0x1a   : > { %v188_v1 = vld [vmem:[%s174_s27] sm:$0xff]  ;;  %s326_s24 = scalar_lea.sflag [#allocation7], %s165_s3  ;;  %s516_s26 = sshll.u32 %s595_s12, 4  ;;  %s517_s26 = int_to_ptr.vmem [resolvable:$false] %s516_s26 }
  0x1b   : > { %v197_v2 = vsel %vm196_vm1, %v188_v1, -inf  ;;  %v189_v4 = vld [vmem:[%s178_s30] sm:$0xff]  ;;  %s518_s27 = scalar_lea.vmem %s517_s26, 256  ;;  %p519_p1 = scmp.lt.s32.totalorder %s705_s16, %s517_s26 }
  0x1c   : > { %198 = vmax.xlane.f32.xlu0 %v197_v2  ;;  %223 = vperm.xlu1 %499, %v189_v4   ;;  %v232_v10 = vrot.slane %v197_v2, 4  ;;  %vm264_vm3 = vcmp.ne.s32.totalorder %v189_v4, 4294967295  ;;  %p520_p2 = scmp.lt.s32.totalorder %s518_s27, %s512_s25 }
  0x1d   : > { %v429_v43 = vsel %vm264_vm3, 1.0, %v594_v5 }
  0x1e   : > { %v233_v11 = vmax.f32 %v197_v2, %v232_v10  ;;  %v285_v44 = vsel %vm183_vm0, %v429_v43, 0.0  ;;  %p521_p3 = por %p520_p2, %p519_p1 }
  0x20   : > { %v234_v12 = vrot.slane %v233_v11, 2  ;;  %p522_p5 = pnand %p521_p3, %p515_p0 }
  0x22   : > { %v235_v13 = vmax.f32 %v233_v11, %v234_v12 }
  0x24   : > { %v236_v14 = vrot.slane %v235_v13, 1 }
  0x26   : > { %v237_v15 = vmax.f32 %v235_v13, %v236_v14 }
  0x28   : > { %v238_v16 = vsub.f32 %v188_v1, %v237_v15 }
  0x2a   : > { %v239_v17 = vmul.f32 1.442695, %v238_v16 }
  0x2c   : > { %500 = vpow2.f32 %v239_v17 }
  0x36   : > { %v501_v18 = vpop.eup %500 }
  0x37   : > { %v241_v19 = vsel %vm196_vm1, %v501_v18, 0.0 }
  0x38   : > { %v242_v20 = vrot.slane %v241_v19, 4 }
  0x3a   : > { %v243_v21 = vadd.f32 %v242_v20, %v241_v19 }
  0x3c   : > { %v244_v22 = vrot.slane %v243_v21, 2 }
  0x3e   : > { %v245_v23 = vadd.f32 %v244_v22, %v243_v21 }
  0x40   : > { %v246_v24 = vrot.slane %v245_v23, 1 }
  0x42   : > { %v247_v25 = vadd.f32 %v246_v24, %v245_v23 }
  0x44   : > { %502 = vlog2.f32 %v247_v25 }
  0x45   : > { %504 = vrcp.f32 %v247_v25 }
  0x4e   : > { %v503_v30 = vpop.eup %502 }
  0x4f   : > { %v252_v33 = vmul.f32 0.6931472, %v503_v30  ;;  %v505_v34 = vpop.eup %504  ;;  %v310_v30 = vshrl.u32 %v190_v29, 7 }
  0x50   : > { %v250_v35 = vmul.f32 %v505_v34, %v501_v18 }
  0x51   : > { %v253_v36 = vsub.f32 %v238_v16, %v252_v33  ;;  %vm322_vm7 = vcmp.eq.s32.totalorder %v310_v30, 0 }
  0x53   : > { %v254_v41 = vmul.f32 %v253_v36, %v250_v35 }
  0x55   : > { %v256_v42 = vsel %vm196_vm1, %v254_v41, 0.0 }
  0x9b   : > { %v224_v32 = vpop.permute.xlu1 %223 }
  0x9c   : > { %vm225_vm2 = vcmp.eq.s32.totalorder %v682_v31, %v224_v32 }
  0x9d   : > { %v226_v38 = vsel %vm225_vm2, %v188_v1, 0.0 }
  0x9e   : > { %v227_v40 = vsel %vm196_vm1, %v226_v38, 0.0 }
  0xa9   : > { %v199_v7 = vpop.xlane.xlu0 %198 }
  0xaa   : > { %v200_v8 = vmax.f32 %v195_v6, %v199_v7 }
  0xac   : > { %v209_v9 = vsub.f32 %v195_v6, %v200_v8  ;;  %220 = vst.msk [vmem:[#allocation2] sm:$0xff] %vm183_vm0, %v200_v8  ;;  %203 = vperm.xlu0 %498, %v200_v8  }
  0xae   : > { %v210_v45 = vmul.f32 1.442695, %v209_v9 }
  0xb3   : > { %v267_v0 = vld [vmem:[#allocation2] sm:$0xff] }
 0x12b   : > { %v204_v26 = vpop.permute.xlu0 %203 }
 0x12c   : > { %v206_v27 = vsub.f32 %v188_v1, %v204_v26 }
 0x12e   : > { %v207_v28 = vmul.f32 1.442695, %v206_v27 }
 0x130   : > { %506 = vpow2.f32 %v207_v28 }
 0x131   : > { %508 = vpow2.f32 %v210_v45 }
 0x13a   : > { %v507_v37 = vpop.eup %506 }
 0x13b   : > { %v214_v39 = vsel %vm196_vm1, %v507_v37, 0.0  ;;  %v509_v46 = vpop.eup %508 }
 0x13c   : > { %215 = vadd.xlane.f32.xlu1 %v214_v39  ;;  %v213_v48 = vmul.f32 %v509_v46, %v212_v47 }
 0x140   : > { %228 = vadd.xlane.f32.xlu1 %v227_v40 }
 0x144   : > { %257 = vadd.xlane.f32.xlu1 %v256_v42 }
 0x148   : > { %286 = vadd.xlane.f32.xlu1 %v285_v44 }
 0x1c9   : > { %v216_v49 = vpop.xlane.xlu1 %215 }
 0x1ca   : > { %v217_v50 = vadd.f32 %v216_v49, %v213_v48 }
 0x1cc   : > { %219 = vst.msk [vmem:[#allocation3] sm:$0xff] %vm183_vm0, %v217_v50 }
 0x1cd   : > { %v229_v52 = vpop.xlane.xlu1 %228 }
 0x1ce   : > { %v230_v53 = vadd.f32 %v229_v52, %v221_v51 }
 0x1d0   : > { %231 = vst.msk [vmem:[#allocation4] sm:$0xff] %vm183_vm0, %v230_v53 }
 0x1d1   : > { %v258_v55 = vpop.xlane.xlu1 %257 }
 0x1d2   : > { %v259_v56 = vadd.f32 %v258_v55, %v255_v54 }
 0x1d3   : > { %v268_v57 = vld [vmem:[#allocation3] sm:$0xff] }
 0x1d4   : > { %260 = vst.msk [vmem:[#allocation5] sm:$0xff] %vm183_vm0, %v259_v56  ;;  %510 = vlog2.f32 %v268_v57 }
 0x1d5   : > { %v287_v7 = vpop.xlane.xlu1 %286 }
 0x1d6   : > { %v288_v8 = vrot.slane %v287_v7, 4 }
 0x1d7   : > { %v272_v3 = vld [vmem:[#allocation4] sm:$0xff] }
 0x1d8   : > { %v289_v10 = vadd.f32 %v288_v8, %v287_v7 }
 0x1da   : > { %v290_v13 = vrot.slane %v289_v10, 2 }
 0x1db   : > { %v295_v58 = vld [vmem:[#allocation5] sm:$0xff] }
 0x1dc   : > { %v296_v59 = vmul.f32 0.28853902, %v295_v58  ;;  %v291_v18 = vadd.f32 %v290_v13, %v289_v10 }
 0x1de   : > { %v511_v60 = vpop.eup %510  ;;  %v297_v61 = vadd.f32 1.0, %v296_v59  ;;  %v292_v22 = vrot.slane %v291_v18, 1 }
 0x1df   : > { %v270_v62 = vmul.f32 0.6931472, %v511_v60 }
 0x1e0   : > { %v298_v63 = vmul.f32 %v297_v61, %v295_v58  ;;  %v293_v26 = vadd.f32 %v292_v22, %v291_v18 }
 0x1e1   : > { %v271_v1 = vadd.f32 %v270_v62, %v267_v0 }
 0x1e2   : > { %v299_v2 = vsel %vm183_vm0, %v298_v63, 0.0 }
 0x1e3   : > { %300 = vadd.xlane.f32.xlu1 %v299_v2  ;;  %v273_v4 = vsub.f32 %v271_v1, %v272_v3 }
 0x1e5   : > { %v274_v5 = vmul.f32 %v429_v43, %v273_v4 }
 0x1e7   : > { %v275_v6 = vsel %vm183_vm0, %v274_v5, 0.0 }
 0x1e8   : > { %276 = vadd.xlane.f32.xlu0 %v275_v6 }
 0x270   : > { %v301_v9 = vpop.xlane.xlu1 %300 }
 0x271   : > { %v302_v11 = vrot.slane %v301_v9, 4 }
 0x273   : > { %v303_v12 = vadd.f32 %v302_v11, %v301_v9 }
 0x275   : > { %v277_v14 = vpop.xlane.xlu0 %276  ;;  %v304_v15 = vrot.slane %v303_v12, 2 }
 0x276   : > { %v278_v16 = vrot.slane %v277_v14, 4 }
 0x277   : > { %v305_v19 = vadd.f32 %v304_v15, %v303_v12 }
 0x278   : > { %v279_v17 = vadd.f32 %v278_v16, %v277_v14 }
 0x279   : > { %v306_v24 = vrot.slane %v305_v19, 1 }
 0x27a   : > { %v280_v20 = vrot.slane %v279_v17, 2 }
 0x27b   : > { %v307_v27 = vadd.f32 %v306_v24, %v305_v19 }
 0x27c   : > { %v281_v21 = vadd.f32 %v280_v20, %v279_v17 }
 0x27e   : > { %v282_v23 = vrot.slane %v281_v21, 1 }
 0x280   : > { %v283_v25 = vadd.f32 %v282_v23, %v281_v21 }
 0x282   : > { %434 = vpush %v283_v25 }
 0x283   : > { %436 = vpush %v293_v26 }
 0x284   : > { %438 = vpush %v307_v27 }
 0x2b3   : > { %s435_s5 = spop %434 }
 0x2b4   : > { %v312_v28 = vstv %s435_s5  ;;  %s437_s6 = spop %436 }
 0x2b5   : > { %v313_v32 = vsel %vm311_vm4, %v312_v28, 0.0  ;;  %v315_v33 = vstv %s437_s6  ;;  %s439_s7 = spop %438 }
 0x2b6   : > { %v316_v34 = vsel %vm314_vm5, %v315_v33, 0.0  ;;  %v319_v35 = vstv %s439_s7 }
 0x2b7   : > { %v317_v36 = vadd.f32 %v316_v34, %v313_v32  ;;  %v320_v37 = vsel %vm318_vm6, %v319_v35, 0.0 }
 0x2b9   : > { %v321_v38 = vadd.f32 %v320_v37, %v317_v36 }
 0x2bb   : > { %v323_v29 = vsel %vm322_vm7, %v321_v38, 0.0 }
 0x2bc   : > { %324 = vst [vmem:[%s167_s15] sm:$0xff] %v323_v29 }
 0x2bd   : > { %525 = shalt.err (!%p522_p5)
}
 0x2be   : > { %s526_s28 = scalar_lea.hbm %s703_s23, 128  ;;  %s530_s3 = scalar_lea.hbm %s752_s2, 256 }
 0x2bf   : > { %p527_p6 = scmp.ne.s32.totalorder %s703_s23, %s526_s28  ;;  %p531_p10 = scmp.lt.u32.totalorder %s703_s23, %s752_s2 }
 0x2c0   : > { %p532_p11 = scmp.lt.u32.totalorder %s530_s3, %s526_s28  ;;  %p534_p13 = scmp.lt.u32.totalorder %s526_s28, %s703_s23 }
 0x2c1   : > { %p528_p7 = pnand %p527_p6, %p651_p4 }
 0x2c2   : > { %p533_p12 = por %p532_p11, %p531_p10 }
 0x2c3   : > { %p529_p9 = pneg %p528_p7 }
 0x2c4   : > { %p535_p0 = por %p534_p13, %p533_p12 }
 0x2c6   : > { %p536_p1 = pnand %p535_p0, %p529_p9 }
 0x2c8   : > { %539 = shalt.err (!%p536_p1)
}
 0x2c9   : > { %440 = dma.vmem_to_hbm [thread:$0]  (%p651_p4), %s705_s16, 128, %s703_s23, %s326_s24  }
 0x2ca PF: > { %p446_p2 = scmp.ge.s32.totalorder %s590_s14, 2  ;;  %s351_s6 = sand.u32 1, %s570_s9  }
 0x2cb   : > { %s352_s7 = scalar_lea.sflag [#allocation7], %s351_s6 }
 0x2cc   : > { %p443_p3 = pnand %p446_p2, %p658_p8 }
 0x2ce   : > { %565 = dma.done.wait (!%p443_p3), %s352_s7, 128  }
 0x2cf   : > { %567 = vsyncadd (!%p443_p3), %s352_s7, 4294967168  ;;  %s15_s14 = sadd.s32 1, %s590_s14   ;;  %s755_s9 = smov %s574_s10 }
 0x2d0   : > { %p12_p5 = scmp.ge.s32.totalorder %s15_s14, 4   ;;  %s756_s10 = smov %s578_s11 }
 0x2d1   : > { %s757_s11 = smov %s664_s22  ;;  %s758_s12 = smov %s586_s13 }
 0x2d2   : > { %s759_s13 = smov %s761_s17  ;;  %14 = sbr.rel (!%p12_p5) target bundleno = 4 (0x4), region = 74 }
 0x2d9   :  { %357 = vsyncpa [#allocation7], 1 }
 0x2da   :  { %359 = vsyncpa [#allocation7 + $0x1], 1 }

</bundles_post_ra>
